<compile_context>
chip_gen: v7x
topology: tpu7x:2x2x1
jax: 0.10.0
libtpu: 0.0.40
codegen_flags: <defaults>
</compile_context>

<pallas_src>
import jax
import jax.numpy as jnp
from jax import lax
from jax.experimental import pallas as pl
from jax.experimental.pallas import tpu as pltpu

HIDDEN = 64          # logical hidden width (matches the PyTorch module)
HIDDEN_PAD = 128     # lane-dense padded hidden width
MIN_TILE = 128       # batch tile granularity (keeps the [1, TB] store lane-dense)
MAX_TILE = 2048      # batch tile (rows) for large batches


def _round_up(x, m):
    return (x + m - 1) // m * m


def mlp_q_kernel(x_ref, w1_ref, b1_ref, w2_ref, b2_ref, w3_ref, b3_ref, q_ref):
    # x tile: [TB, obs_dim]; cast to the weight dtype in-kernel (no-op for f32,
    # cheap VALU op for bf16 that hides under the matmul).
    x = x_ref[...].astype(w1_ref.dtype)

    h1 = jnp.dot(x, w1_ref[...], preferred_element_type=jnp.float32) + b1_ref[...]
    h1 = jnp.maximum(h1, 0.0)                                       # ReLU in f32

    h2 = jnp.dot(h1.astype(w2_ref.dtype), w2_ref[...],
                 preferred_element_type=jnp.float32) + b2_ref[...]
    h2 = jnp.maximum(h2, 0.0)                                       # ReLU in f32

    # Final (padded) 128 -> 1 layer, emitted directly as a [1, TB] row so the
    # store is lane-dense: q_row = w3_row @ h2^T  (NT contraction on dim 1).
    q_row = lax.dot_general(
        w3_ref[...], h2.astype(w3_ref.dtype),
        (((1,), (1,)), ((), ())),
        preferred_element_type=jnp.float32) + b3_ref[...]           # [1, TB]

    q_ref[...] = q_row[None, :, :].astype(q_ref.dtype)              # [1, 1, TB]


def mlp_q_forward(x, params):
    """Returns q of shape [B, 1] (same semantics as MLPQFunction.forward)."""
    B, obs_dim = x.shape

    # Batch tiling: small batches -> one padded 128-row tile; large -> 2048-row tiles.
    tb = min(MAX_TILE, _round_up(max(B, 1), MIN_TILE))
    Bp = _round_up(B, tb)
    if Bp != B:
        x = jnp.pad(x, ((0, Bp - B), (0, 0)))
    num_tiles = Bp // tb

    # Weights/biases: whole-array, VMEM-resident (DMA'd once, reused per tile,
    # not double-buffered — they are grid-invariant).
    resident = pl.BlockSpec(memory_space=pltpu.MemorySpace.VMEM)

    q_rows = pl.pallas_call(
        mlp_q_kernel,
        grid=(num_tiles,),
        in_specs=[
            pl.BlockSpec((tb, obs_dim), lambda i: (i, 0)),   # batch-tiled obs
            resident, resident,                              # w1, b1
            resident, resident,                              # w2, b2
            resident, resident,                              # w3, b3
        ],
        # Transposed, skinny output: one lane-dense [1, TB] row per tile.
        out_specs=pl.BlockSpec((1, 1, tb), lambda i: (i, 0, 0)),
        out_shape=jax.ShapeDtypeStruct((num_tiles, 1, tb), jnp.float32),
        compiler_params=pltpu.CompilerParams(
            dimension_semantics=("parallel",)),
    )(x, params["w1"], params["b1"], params["w2"], params["b2"],
      params["w3"], params["b3"])

    # Free reshape + contiguous row slice (no strided column gather).
    return q_rows.reshape(Bp, 1)[:B]


def orthogonal(key, rows, cols, gain=1.0):
    """Deterministic orthogonal init (same spirit as nn.init.orthogonal_).
    Note: not bit-identical to PyTorch's QR convention; functionally equivalent."""
    n = max(rows, cols)
    a = jax.random.normal(key, (n, n), dtype=jnp.float32)
    q, r = jnp.linalg.qr(a)
    d = jnp.diag(r)
    q = q * jnp.where(d >= 0, 1.0, -1.0)
    return gain * q[:rows, :cols]


def make_params(key, obs_dim, *, matmul_dtype=jnp.float32):
    """Build padded params. Weights are stored once in `matmul_dtype`
    (f32 or bf16); biases stay f32. Padding is mathematically exact."""
    k1, k2, k3 = jax.random.split(key, 3)
    # PyTorch Linear weight is [out, in]; store fc1/fc2 transposed [in, out],
    # fc4 in row form [1, hidden] (used via an NT contraction in the kernel).
    w1 = orthogonal(k1, HIDDEN, obs_dim).T        # [obs, 64]
    w2 = orthogonal(k2, HIDDEN, HIDDEN).T         # [64, 64]
    w3 = orthogonal(k3, 1, HIDDEN)                # [1, 64]
    w1p = jnp.zeros((obs_dim, HIDDEN_PAD), jnp.float32).at[:, :HIDDEN].set(w1)
    w2p = jnp.zeros((HIDDEN_PAD, HIDDEN_PAD), jnp.float32).at[:HIDDEN, :HIDDEN].set(w2)
    w3p = jnp.zeros((1, HIDDEN_PAD), jnp.float32).at[:, :HIDDEN].set(w3)
    return {
        "w1": w1p.astype(matmul_dtype), "b1": jnp.zeros((1, HIDDEN_PAD), jnp.float32),
        "w2": w2p.astype(matmul_dtype), "b2": jnp.zeros((1, HIDDEN_PAD), jnp.float32),
        "w3": w3p.astype(matmul_dtype), "b3": jnp.zeros((1, 1), jnp.float32),
    }


def reference_forward(x, params):
    w1 = params["w1"].astype(jnp.float32)
    w2 = params["w2"].astype(jnp.float32)
    w3 = params["w3"].astype(jnp.float32)
    h1 = jnp.maximum(x @ w1 + params["b1"], 0.0)
    h2 = jnp.maximum(h1 @ w2 + params["b2"], 0.0)
    return h2 @ w3.T + params["b3"]                # [B, 1]


if __name__ == "__main__":
    key = jax.random.PRNGKey(0)
    k_param, k_x1, k_x2 = jax.random.split(key, 3)

    obs_dim = 16
    params = make_params(k_param, obs_dim)

    # Small batch (single 128-row padded tile).
    B = 8
    x = jax.random.normal(k_x1, (B, obs_dim), dtype=jnp.float32)
    q = mlp_q_forward(x, params)
    jax.block_until_ready(q)
    q_ref = reference_forward(x, params)
    assert q.shape == (B, 1)
    assert jnp.allclose(q, q_ref, atol=1e-4, rtol=1e-4)

    # Larger, non-tile-multiple batch: exercises the batch grid, padding,
    # VMEM-resident weights across multiple tiles, and the skinny output path.
    B2 = 2600                                    # -> tb=2048, 2 grid tiles
    x2 = jax.random.normal(k_x2, (B2, obs_dim), dtype=jnp.float32)
    q2 = mlp_q_forward(x2, params)
    jax.block_until_ready(q2)
    q2_ref = reference_forward(x2, params)
    assert q2.shape == (B2, 1)
    assert jnp.allclose(q2, q2_ref, atol=1e-4, rtol=1e-4)

    # bf16 weights (pre-cast once in make_params; activations cast in-kernel),
    # f32 accumulation / bias / ReLU. Compared against the same bf16 weights
    # upcast to f32, so only activation-precision drift remains.
    params_bf16 = make_params(k_param, obs_dim, matmul_dtype=jnp.bfloat16)
    q_bf16 = mlp_q_forward(x2, params_bf16)
    jax.block_until_ready(q_bf16)
    q_bf16_ref = reference_forward(x2, params_bf16)
    assert jnp.allclose(q_bf16, q_bf16_ref, atol=5e-2, rtol=5e-2)

    print("KERNEL_OK")
</pallas_src>

<mosaic_0001>
module attributes {stable_mosaic.version = 11 : i64} {
  func.func @mlp_q_kernel(%arg0: i32, %arg1: memref<128x16xf32, #tpu.memory_space<vmem>>, %arg2: memref<16x128xf32, #tpu.memory_space<vmem>>, %arg3: memref<1x128xf32, #tpu.memory_space<vmem>>, %arg4: memref<128x128xf32, #tpu.memory_space<vmem>>, %arg5: memref<1x128xf32, #tpu.memory_space<vmem>>, %arg6: memref<1x128xf32, #tpu.memory_space<vmem>>, %arg7: memref<1x1xf32, #tpu.memory_space<vmem>>, %arg8: memref<1x1x128xf32, #tpu.memory_space<vmem>>) attributes {dimension_semantics = [#tpu.dimension_semantics<parallel>], iteration_bounds = array<i64: 1>, scalar_prefetch = 0 : i64, scratch_operands = 0 : i64, tpu.core_type = #tpu.core_type<tc>, window_params = [{transform_indices = @transform_0, window_bounds = array<i64: 128, 16>}, {pipeline_mode = #tpu.pipeline_mode<synchronous>, transform_indices = @transform_1, window_bounds = array<i64: 16, 128>}, {pipeline_mode = #tpu.pipeline_mode<synchronous>, transform_indices = @transform_2, window_bounds = array<i64: 1, 128>}, {pipeline_mode = #tpu.pipeline_mode<synchronous>, transform_indices = @transform_3, window_bounds = array<i64: 128, 128>}, {pipeline_mode = #tpu.pipeline_mode<synchronous>, transform_indices = @transform_4, window_bounds = array<i64: 1, 128>}, {pipeline_mode = #tpu.pipeline_mode<synchronous>, transform_indices = @transform_5, window_bounds = array<i64: 1, 128>}, {pipeline_mode = #tpu.pipeline_mode<synchronous>, transform_indices = @transform_6, window_bounds = array<i64: 1, 1>}, {transform_indices = @transform_7, window_bounds = array<i64: 1, 1, 128>}]} {
    %c0 = arith.constant 0 : index
    %c0_0 = arith.constant 0 : index
    %0 = vector.load %arg1[%c0, %c0_0] : memref<128x16xf32, #tpu.memory_space<vmem>>, vector<128x16xf32>
    %c0_1 = arith.constant 0 : index
    %c0_2 = arith.constant 0 : index
    %1 = vector.load %arg2[%c0_1, %c0_2] : memref<16x128xf32, #tpu.memory_space<vmem>>, vector<16x128xf32>
    %cst = arith.constant dense<0.000000e+00> : vector<128x128xf32>
    %2 = tpu.matmul %0, %1, %cst {dimension_numbers = #tpu.dot_dimension_numbers<[1], [0], [0], [1], [0, 0, 1, 1], [], []>} : vector<128x16xf32>, vector<16x128xf32>, vector<128x128xf32> -> vector<128x128xf32>
    %c0_3 = arith.constant 0 : index
    %c0_4 = arith.constant 0 : index
    %3 = vector.load %arg3[%c0_3, %c0_4] : memref<1x128xf32, #tpu.memory_space<vmem>>, vector<1x128xf32>
    %4 = vector.broadcast %3 : vector<1x128xf32> to vector<128x128xf32>
    %5 = arith.addf %2, %4 : vector<128x128xf32>
    %cst_5 = arith.constant 0.000000e+00 : f32
    %6 = vector.broadcast %cst_5 : f32 to vector<128x128xf32>
    %7 = arith.maximumf %5, %6 : vector<128x128xf32>
    %c0_6 = arith.constant 0 : index
    %c0_7 = arith.constant 0 : index
    %8 = vector.load %arg4[%c0_6, %c0_7] : memref<128x128xf32, #tpu.memory_space<vmem>>, vector<128x128xf32>
    %cst_8 = arith.constant dense<0.000000e+00> : vector<128x128xf32>
    %9 = tpu.matmul %7, %8, %cst_8 {dimension_numbers = #tpu.dot_dimension_numbers<[1], [0], [0], [1], [0, 0, 1, 1], [], []>} : vector<128x128xf32>, vector<128x128xf32>, vector<128x128xf32> -> vector<128x128xf32>
    %c0_9 = arith.constant 0 : index
    %c0_10 = arith.constant 0 : index
    %10 = vector.load %arg5[%c0_9, %c0_10] : memref<1x128xf32, #tpu.memory_space<vmem>>, vector<1x128xf32>
    %11 = vector.broadcast %10 : vector<1x128xf32> to vector<128x128xf32>
    %12 = arith.addf %9, %11 : vector<128x128xf32>
    %cst_11 = arith.constant 0.000000e+00 : f32
    %13 = vector.broadcast %cst_11 : f32 to vector<128x128xf32>
    %14 = arith.maximumf %12, %13 : vector<128x128xf32>
    %c0_12 = arith.constant 0 : index
    %c0_13 = arith.constant 0 : index
    %15 = vector.load %arg6[%c0_12, %c0_13] : memref<1x128xf32, #tpu.memory_space<vmem>>, vector<1x128xf32>
    %cst_14 = arith.constant dense<0.000000e+00> : vector<1x128xf32>
    %16 = tpu.matmul %15, %14, %cst_14 {dimension_numbers = #tpu.dot_dimension_numbers<[1], [1], [0], [0], [0, 0, 1, 0], [], []>} : vector<1x128xf32>, vector<128x128xf32>, vector<1x128xf32> -> vector<1x128xf32>
    %c0_15 = arith.constant 0 : index
    %c0_16 = arith.constant 0 : index
    %17 = vector.load %arg7[%c0_15, %c0_16] : memref<1x1xf32, #tpu.memory_space<vmem>>, vector<1x1xf32>
    %18 = vector.broadcast %17 : vector<1x1xf32> to vector<1x128xf32>
    %19 = arith.addf %16, %18 : vector<1x128xf32>
    %20 = vector.shape_cast %19 : vector<1x128xf32> to vector<1x1x128xf32>
    %c0_17 = arith.constant 0 : index
    %c0_18 = arith.constant 0 : index
    %c0_19 = arith.constant 0 : index
    %21 = vector.load %arg8[%c0_17, %c0_18, %c0_19] : memref<1x1x128xf32, #tpu.memory_space<vmem>>, vector<1x1x128xf32>
    tpu.vector_store %arg8[%c0_17, %c0_18, %c0_19], %20 {strides = array<i32>} : memref<1x1x128xf32, #tpu.memory_space<vmem>>, vector<1x1x128xf32>,
    return
  }
  func.func @transform_0(%arg0: i32) -> (i32, i32) {
    %c0_i32 = arith.constant 0 : i32
    %c0_i32_0 = arith.constant 0 : i32
    return %arg0, %c0_i32 : i32, i32
  }
  func.func @transform_1(%arg0: i32) -> (i32, i32) {
    %c0_i32 = arith.constant 0 : i32
    %c0_i32_0 = arith.constant 0 : i32
    %c0_i32_1 = arith.constant 0 : i32
    return %c0_i32, %c0_i32_0 : i32, i32
  }
  func.func @transform_2(%arg0: i32) -> (i32, i32) {
    %c0_i32 = arith.constant 0 : i32
    %c0_i32_0 = arith.constant 0 : i32
    %c0_i32_1 = arith.constant 0 : i32
    return %c0_i32, %c0_i32_0 : i32, i32
  }
  func.func @transform_3(%arg0: i32) -> (i32, i32) {
    %c0_i32 = arith.constant 0 : i32
    %c0_i32_0 = arith.constant 0 : i32
    %c0_i32_1 = arith.constant 0 : i32
    return %c0_i32, %c0_i32_0 : i32, i32
  }
  func.func @transform_4(%arg0: i32) -> (i32, i32) {
    %c0_i32 = arith.constant 0 : i32
    %c0_i32_0 = arith.constant 0 : i32
    %c0_i32_1 = arith.constant 0 : i32
    return %c0_i32, %c0_i32_0 : i32, i32
  }
  func.func @transform_5(%arg0: i32) -> (i32, i32) {
    %c0_i32 = arith.constant 0 : i32
    %c0_i32_0 = arith.constant 0 : i32
    %c0_i32_1 = arith.constant 0 : i32
    return %c0_i32, %c0_i32_0 : i32, i32
  }
  func.func @transform_6(%arg0: i32) -> (i32, i32) {
    %c0_i32 = arith.constant 0 : i32
    %c0_i32_0 = arith.constant 0 : i32
    %c0_i32_1 = arith.constant 0 : i32
    return %c0_i32, %c0_i32_0 : i32, i32
  }
  func.func @transform_7(%arg0: i32) -> (i32, i32, i32) {
    %c0_i32 = arith.constant 0 : i32
    %c0_i32_0 = arith.constant 0 : i32
    %c0_i32_1 = arith.constant 0 : i32
    return %arg0, %c0_i32, %c0_i32_0 : i32, i32, i32
  }
}

</mosaic_0001>

<bundles_post_ra>
// kernel: tpu_custom_call.1
= control target key start
LH: loop header
LB: loop body
LE: loop exit
PB: predicated region body
PF: predicated region fallthrough
CT: control target
= control target key end

     0   :  { %s1033_s0 = inlined_call_operand.vmem [shape: f32[128,16], index: 0, kind: input, shape index: {}]   ;;  %s1034_s1 = inlined_call_operand.vmem [shape: f32[16,128], index: 1, kind: input, shape index: {}]   ;;  %s1035_s2 = inlined_call_operand.vmem [shape: f32[1,128], index: 2, kind: input, shape index: {}]   ;;  %s1036_s3 = inlined_call_operand.vmem [shape: f32[128,128], index: 3, kind: input, shape index: {}]   ;;  %s1037_s4 = inlined_call_operand.vmem [shape: f32[1,128], index: 4, kind: input, shape index: {}]   ;;  %s1038_s5 = inlined_call_operand.vmem [shape: f32[1,128], index: 5, kind: input, shape index: {}]   ;;  %s1039_s6 = inlined_call_operand.<no memory space> [shape: f32[1,1], index: 6, kind: input, shape index: {}]   ;;  %s1040_s7 = inlined_call_operand.hbm [shape: f32[1,1,128], index: 7, kind: output, shape index: {}]  }
   0x1   :  { %v12_v0 = vstv %s1039_s6 }
   0x2   :  { %13 = vst [vmem:[#allocation2] sm:$0x1] %v12_v0 }
   0x3   :  { %v45_v1 = vld [vmem:[%s1034_s1] sm:$0xff]  ;;  %v46_v2 = vld [vmem:[%s1034_s1 + $0x8] sm:$0xff]  ;;  %vm54_vm0 = vcmask 130048   ;;  %v31_v6 = vld [vmem:[%s1033_s0 + $0x10] sm:$0xff] }
   0x4   :  { %v29_v3 = vld [vmem:[%s1033_s0] sm:$0xff]  ;;  %v748_v4 = vpack.c.bf16 %v46_v2, %v45_v1  ;;  %v30_v5 = vld [vmem:[%s1033_s0 + $0x8] sm:$0xff]  ;;  %v266_v9 = vld [vmem:[%s1036_s3 + $0x10] sm:$0xff] }
   0x5   :  { %633 = vmatprep.mubr.msk.f32.mxu1 %vm54_vm0, %v29_v3  ;;  %v264_v7 = vld [vmem:[%s1036_s3] sm:$0xff]  ;;  %v265_v8 = vld [vmem:[%s1036_s3 + $0x8] sm:$0xff]  ;;  %v267_v11 = vld [vmem:[%s1036_s3 + $0x18] sm:$0xff] }
   0x6   :  { %749 = vmatprep.subr.bf16.mxu1 %v748_v4  ;;  %v752_v10 = vpack.c.bf16 %v265_v8, %v264_v7  ;;  %v32_v12 = vld [vmem:[%s1033_s0 + $0x18] sm:$0xff]  ;;  %v756_v13 = vpack.c.bf16 %v267_v11, %v266_v9  ;;  %v268_v14 = vld [vmem:[%s1036_s3 + $0x20] sm:$0xff]  ;;  %v269_v15 = vld [vmem:[%s1036_s3 + $0x28] sm:$0xff] }
   0x7   :  { %751 = vmatpush3.bf16.msra.mxu1 %v748_v4  ;;  %v33_v16 = vld [vmem:[%s1033_s0 + $0x20] sm:$0xff] }
   0x8   :  { %753 = vmatprep.subr.bf16.mxu1 %v752_v10 }
   0xa   :  { %634 = vmatmul.mubr.msk.f32.vlgmr.msra.gmra.mrb[0].mxu1 %vm54_vm0, %v30_v5 }
   0xb   :  { %636 = vmatprep.mubr.msk.f32.mxu1 %vm54_vm0, %v31_v6  ;;  %755 = vmatpush3.bf16.msra.mxu1 %v752_v10 }
   0xc   :  { %14 = vsyncpa [#allocation4], 0  ;;  %757 = vmatprep.subr.bf16.mxu1 %v756_v13  ;;  %v760_v17 = vpack.c.bf16 %v269_v15, %v268_v14  ;;  %v34_v18 = vld [vmem:[%s1033_s0 + $0x28] sm:$0xff]  ;;  %v270_v19 = vld [vmem:[%s1036_s3 + $0x30] sm:$0xff]  ;;  %vm839_vm1 = vmmov 0   ;;  %s842_s21 = smov [#allocation3]  }
   0xd   :  { %v271_v20 = vld [vmem:[%s1036_s3 + $0x38] sm:$0xff]  ;;  %v35_v21 = vld [vmem:[%s1033_s0 + $0x30] sm:$0xff]  ;;  %v272_v24 = vld [vmem:[%s1036_s3 + $0x40] sm:$0xff]  ;;  %s536_s22 = sshll.u32 %s842_s21, 4  ;;  %s537_s22 = int_to_ptr.vmem [resolvable:$true] %s536_s22 }
   0xe   :  { %637 = vmatmul.mubr.msk.f32.gmra.mrb[2].mxu1 %vm54_vm0, %v32_v12  ;;  %v764_v22 = vpack.c.bf16 %v271_v20, %v270_v19  ;;  %v36_v23 = vld [vmem:[%s1033_s0 + $0x38] sm:$0xff]  ;;  %v273_v25 = vld [vmem:[%s1036_s3 + $0x48] sm:$0xff]  ;;  %v37_v26 = vld [vmem:[%s1033_s0 + $0x40] sm:$0xff]  ;;  %s814_s23 = scalar_lea.vmem %s537_s22, 16  ;;  %s818_s24 = scalar_lea.vmem %s537_s22, 32 }
   0xf   :  { %639 = vmatprep.mubr.msk.f32.mxu1 %vm54_vm0, %v33_v16  ;;  %759 = vmatpush3.bf16.msra.mxu1 %v756_v13  ;;  %v768_v27 = vpack.c.bf16 %v273_v25, %v272_v24  ;;  %v38_v28 = vld [vmem:[%s1033_s0 + $0x48] sm:$0xff]  ;;  %v274_v29 = vld [vmem:[%s1036_s3 + $0x50] sm:$0xff]  ;;  %v275_v30 = vld [vmem:[%s1036_s3 + $0x58] sm:$0xff]  ;;  %p815_p0 = scmp.ne.s32.totalorder %s537_s22, %s814_s23  ;;  %p819_p1 = scmp.lt.s32.totalorder %s537_s22, %s537_s22 }
  0x10   :  { %761 = vmatprep.subr.bf16.mxu1 %v760_v17  ;;  %v39_v31 = vld [vmem:[%s1033_s0 + $0x50] sm:$0xff]  ;;  %v772_v32 = vpack.c.bf16 %v275_v30, %v274_v29  ;;  %v40_v33 = vld [vmem:[%s1033_s0 + $0x58] sm:$0xff]  ;;  %v276_v34 = vld [vmem:[%s1036_s3 + $0x60] sm:$0xff]  ;;  %v838_v29 = vmov 0.0|0.0   ;;  %v840_v30 = vmov 0.0   ;;  %p820_p2 = scmp.lt.s32.totalorder %s818_s24, %s814_s23 }
  0x11   :  { %v277_v35 = vld [vmem:[%s1036_s3 + $0x68] sm:$0xff]  ;;  %v41_v36 = vld [vmem:[%s1033_s0 + $0x60] sm:$0xff]  ;;  %v43_v39 = vld [vmem:[%s1033_s0 + $0x70] sm:$0xff]  ;;  %784 = vmatprep.subr.bf16.mxu0 %v838_v29  ;;  %745 = vmatprep.mubr.msk.f32.mxu0 %vm839_vm1, %v840_v30 }
  0x12   :  { %640 = vmatmul.mubr.msk.f32.gmra.mrb[4].mxu1 %vm54_vm0, %v34_v18  ;;  %v776_v37 = vpack.c.bf16 %v277_v35, %v276_v34  ;;  %v42_v38 = vld [vmem:[%s1033_s0 + $0x68] sm:$0xff]  ;;  %v44_v40 = vld [vmem:[%s1033_s0 + $0x78] sm:$0xff]  ;;  %v278_v41 = vld [vmem:[%s1036_s3 + $0x70] sm:$0xff]  ;;  %p821_p3 = por %p820_p2, %p819_p1 }
  0x13   :  { %642 = vmatprep.mubr.msk.f32.mxu1 %vm54_vm0, %v35_v21  ;;  %763 = vmatpush3.bf16.msra.mxu1 %v760_v17  ;;  %v279_v42 = vld [vmem:[%s1036_s3 + $0x78] sm:$0xff]  ;;  %v544_v44 = vld [vmem:[%s1035_s2] ss:$0 sm:$0xff] }
  0x14   :  { %765 = vmatprep.subr.bf16.mxu1 %v764_v22  ;;  %v780_v43 = vpack.c.bf16 %v279_v42, %v278_v41  ;;  %p822_p4 = pnand %p821_p3, %p815_p0 }
  0x16   :  { %643 = vmatmul.mubr.msk.f32.gmra.mrb[6].mxu1 %vm54_vm0, %v36_v23 }
  0x17   :  { %645 = vmatprep.mubr.msk.f32.mxu1 %vm54_vm0, %v37_v26  ;;  %767 = vmatpush3.bf16.msra.mxu1 %v764_v22 }
  0x18   :  { %769 = vmatprep.subr.bf16.mxu1 %v768_v27 }
  0x1a   :  { %646 = vmatmul.mubr.msk.f32.gmra.mrb[8].mxu1 %vm54_vm0, %v38_v28 }
  0x1b   :  { %648 = vmatprep.mubr.msk.f32.mxu1 %vm54_vm0, %v39_v31  ;;  %771 = vmatpush3.bf16.msra.mxu1 %v768_v27  ;;  %v449_v31 = vld [vmem:[#allocation2] sm:$0x1] }
  0x1c   :  { %773 = vmatprep.subr.bf16.mxu1 %v772_v32 }
  0x1e   :  { %649 = vmatmul.mubr.msk.f32.gmra.mrb[10].mxu1 %vm54_vm0, %v40_v33  ;;  %v561_v33 = vld [vmem:[%s1037_s4] ss:$0 sm:$0xff] }
  0x1f   :  { %651 = vmatprep.mubr.msk.f32.mxu1 %vm54_vm0, %v41_v36  ;;  %775 = vmatpush3.bf16.msra.mxu1 %v772_v32  ;;  %v841_v32 = vmov 0  }
  0x20   :  { %777 = vmatprep.subr.bf16.mxu1 %v776_v37  ;;  %813 = vset.pattern.permute.xlu0 %v841_v32 }
  0x21   :  { %452 = vperm.xlu0 %813, %v449_v31  }
  0x22   :  { %652 = vmatmul.mubr.msk.f32.gmra.mrb[12].mxu1 %vm54_vm0, %v42_v38 }
  0x23   :  { %654 = vmatprep.mubr.msk.f32.mxu1 %vm54_vm0, %v43_v39  ;;  %779 = vmatpush3.bf16.msra.mxu1 %v776_v37 }
  0x24   :  { %781 = vmatprep.subr.bf16.mxu1 %v780_v43 }
  0x26   :  { %655 = vmatmul.mubr.msk.f32.gmra.mrb[14].mxu1 %vm54_vm0, %v44_v40 }
  0x27   :  { %783 = vmatpush3.bf16.msra.mxu1 %v780_v43 }
  0xa0   :  { %v453_v31 = vpop.permute.xlu0 %452 }
  0xdd   :  { %v635_v45 = vpop.f32.mrb[0].mxu1 }
  0xde   :  { %v175_v46 = vadd.f32 %v635_v45, %v544_v44  ;;  %v169_v47 = vpop.f32.mrb[1].mxu1 }
  0xdf   :  { %v170_v48 = vadd.f32 %v544_v44, %v169_v47 }
  0xe0   :  { %v249_v51 = vmax.f32 %v175_v46, 0.0 }
  0xe1   :  { %v248_v49 = vmax.f32 %v170_v48, 0.0  ;;  %v638_v50 = vpop.f32.mrb[2].mxu1 }
  0xe2   :  { %v185_v52 = vadd.f32 %v638_v50, %v544_v44  ;;  %v179_v53 = vpop.f32.mrb[3].mxu1 }
  0xe3   :  { %v180_v54 = vadd.f32 %v544_v44, %v179_v53  ;;  %689 = vmatprep.mubr.f32.mxu1 %v248_v49 }
  0xe4   :  { %v251_v55 = vmax.f32 %v185_v52, 0.0  ;;  %690 = vmatmul.mubr.f32.vlgmr.msra.gmra.mrb[16].mxu1 %v249_v51 }
  0xe5   :  { %v250_v56 = vmax.f32 %v180_v54, 0.0  ;;  %v641_v57 = vpop.f32.mrb[4].mxu1 }
  0xe6   :  { %v195_v58 = vadd.f32 %v641_v57, %v544_v44  ;;  %v189_v59 = vpop.f32.mrb[5].mxu1 }
  0xe7   :  { %692 = vmatprep.mubr.f32.mxu1 %v250_v56  ;;  %v190_v60 = vadd.f32 %v544_v44, %v189_v59 }
  0xe8   :  { %693 = vmatmul.mubr.f32.gmra.mrb[18].mxu1 %v251_v55  ;;  %v253_v61 = vmax.f32 %v195_v58, 0.0 }
  0xe9   :  { %v252_v62 = vmax.f32 %v190_v60, 0.0  ;;  %v644_v63 = vpop.f32.mrb[6].mxu1 }
  0xea   :  { %v205_v0 = vadd.f32 %v644_v63, %v544_v44  ;;  %v199_v1 = vpop.f32.mrb[7].mxu1 }
  0xeb   :  { %695 = vmatprep.mubr.f32.mxu1 %v252_v62  ;;  %v200_v2 = vadd.f32 %v544_v44, %v199_v1 }
  0xec   :  { %696 = vmatmul.mubr.f32.gmra.mrb[20].mxu1 %v253_v61  ;;  %v255_v3 = vmax.f32 %v205_v0, 0.0 }
  0xed   :  { %v254_v4 = vmax.f32 %v200_v2, 0.0  ;;  %v647_v5 = vpop.f32.mrb[8].mxu1 }
  0xee   :  { %v215_v6 = vadd.f32 %v647_v5, %v544_v44  ;;  %v209_v7 = vpop.f32.mrb[9].mxu1 }
  0xef   :  { %698 = vmatprep.mubr.f32.mxu1 %v254_v4  ;;  %v210_v8 = vadd.f32 %v544_v44, %v209_v7 }
  0xf0   :  { %699 = vmatmul.mubr.f32.gmra.mrb[22].mxu1 %v255_v3  ;;  %v257_v9 = vmax.f32 %v215_v6, 0.0 }
  0xf1   :  { %v256_v10 = vmax.f32 %v210_v8, 0.0  ;;  %v650_v11 = vpop.f32.mrb[10].mxu1 }
  0xf2   :  { %v225_v12 = vadd.f32 %v650_v11, %v544_v44  ;;  %v219_v13 = vpop.f32.mrb[11].mxu1 }
  0xf3   :  { %701 = vmatprep.mubr.f32.mxu1 %v256_v10  ;;  %v220_v14 = vadd.f32 %v544_v44, %v219_v13 }
  0xf4   :  { %702 = vmatmul.mubr.f32.gmra.mrb[24].mxu1 %v257_v9  ;;  %v259_v15 = vmax.f32 %v225_v12, 0.0 }
  0xf5   :  { %v258_v16 = vmax.f32 %v220_v14, 0.0  ;;  %v653_v17 = vpop.f32.mrb[12].mxu1 }
  0xf6   :  { %v235_v18 = vadd.f32 %v653_v17, %v544_v44  ;;  %v229_v19 = vpop.f32.mrb[13].mxu1 }
  0xf7   :  { %704 = vmatprep.mubr.f32.mxu1 %v258_v16  ;;  %v230_v20 = vadd.f32 %v544_v44, %v229_v19 }
  0xf8   :  { %705 = vmatmul.mubr.f32.gmra.mrb[26].mxu1 %v259_v15  ;;  %v261_v21 = vmax.f32 %v235_v18, 0.0 }
  0xf9   :  { %v260_v22 = vmax.f32 %v230_v20, 0.0  ;;  %v656_v23 = vpop.f32.mrb[14].mxu1 }
  0xfa   :  { %v245_v24 = vadd.f32 %v656_v23, %v544_v44  ;;  %v239_v25 = vpop.f32.mrb[15].mxu1 }
  0xfb   :  { %707 = vmatprep.mubr.f32.mxu1 %v260_v22  ;;  %v240_v26 = vadd.f32 %v544_v44, %v239_v25 }
  0xfc   :  { %708 = vmatmul.mubr.f32.gmra.mrb[28].mxu1 %v261_v21  ;;  %v263_v27 = vmax.f32 %v245_v24, 0.0 }
  0xfd   :  { %v262_v28 = vmax.f32 %v240_v26, 0.0  ;;  %v448_v26 = vld [vmem:[%s1038_s5] sm:$0x1] }
  0xff   :  { %710 = vmatprep.mubr.f32.mxu1 %v262_v28 }
 0x100   :  { %711 = vmatmul.mubr.f32.gmra.mrb[30].mxu1 %v263_v27  ;;  %v455_v27 = vlaneseq }
 0x102   :  { %v456_v28 = vshrl.u32 %v455_v27, 7 }
 0x104   :  { %v457_v30 = vsub.s32 0, %v456_v28 }
 0x106   :  { %v458_v32 = vrot.slane %v453_v31, %v457_v30 }
 0x1b7   :  { %v691_v34 = vpop.f32.mrb[16].mxu1 }
 0x1b8   :  { %v359_v35 = vadd.f32 %v691_v34, %v561_v33  ;;  %v353_v36 = vpop.f32.mrb[17].mxu1 }
 0x1b9   :  { %v354_v37 = vadd.f32 %v561_v33, %v353_v36 }
 0x1ba   :  { %v433_v38 = vmax.f32 %v359_v35, 0.0 }
 0x1bb   :  { %v432_v39 = vmax.f32 %v354_v37, 0.0  ;;  %v694_v40 = vpop.f32.mrb[18].mxu1 }
 0x1bc   :  { %v369_v41 = vadd.f32 %v694_v40, %v561_v33  ;;  %v363_v42 = vpop.f32.mrb[19].mxu1 }
 0x1bd   :  { %v364_v43 = vadd.f32 %v561_v33, %v363_v42  ;;  %v785_v44 = vpack.c.bf16 %v433_v38, %v432_v39 }
 0x1be   :  { %v435_v45 = vmax.f32 %v369_v41, 0.0 }
 0x1bf   :  { %v434_v46 = vmax.f32 %v364_v43, 0.0  ;;  %786 = vmatpush3.bf16.xpose.msra.mxu0 %v785_v44  ;;  %v697_v47 = vpop.f32.mrb[20].mxu1 }
 0x1c0   :  { %v379_v48 = vadd.f32 %v697_v47, %v561_v33  ;;  %v373_v49 = vpop.f32.mrb[21].mxu1  ;;  %787 = vmatprep.subr.bf16.mxu0 %v838_v29 }
 0x1c1   :  { %v788_v50 = vpack.c.bf16 %v435_v45, %v434_v46  ;;  %v374_v51 = vadd.f32 %v561_v33, %v373_v49 }
 0x1c2   :  { %v437_v52 = vmax.f32 %v379_v48, 0.0 }
 0x1c3   :  { %v436_v53 = vmax.f32 %v374_v51, 0.0  ;;  %v700_v54 = vpop.f32.mrb[22].mxu1 }
 0x1c4   :  { %v389_v55 = vadd.f32 %v700_v54, %v561_v33  ;;  %v383_v56 = vpop.f32.mrb[23].mxu1 }
 0x1c5   :  { %v791_v57 = vpack.c.bf16 %v437_v52, %v436_v53  ;;  %v384_v58 = vadd.f32 %v561_v33, %v383_v56 }
 0x1c6   :  { %v439_v59 = vmax.f32 %v389_v55, 0.0 }
 0x1c7   :  { %789 = vmatpush3.bf16.xpose.msra.mxu0 %v788_v50  ;;  %v438_v60 = vmax.f32 %v384_v58, 0.0  ;;  %v703_v61 = vpop.f32.mrb[24].mxu1 }
 0x1c8   :  { %790 = vmatprep.subr.bf16.mxu0 %v838_v29  ;;  %v399_v62 = vadd.f32 %v703_v61, %v561_v33  ;;  %v393_v63 = vpop.f32.mrb[25].mxu1 }
 0x1c9   :  { %v794_v0 = vpack.c.bf16 %v439_v59, %v438_v60  ;;  %v394_v1 = vadd.f32 %v561_v33, %v393_v63 }
 0x1ca   :  { %v441_v2 = vmax.f32 %v399_v62, 0.0 }
 0x1cb   :  { %v440_v3 = vmax.f32 %v394_v1, 0.0  ;;  %v706_v4 = vpop.f32.mrb[26].mxu1 }
 0x1cc   :  { %v409_v5 = vadd.f32 %v706_v4, %v561_v33  ;;  %v403_v6 = vpop.f32.mrb[27].mxu1 }
 0x1cd   :  { %v797_v7 = vpack.c.bf16 %v441_v2, %v440_v3  ;;  %v404_v8 = vadd.f32 %v561_v33, %v403_v6 }
 0x1ce   :  { %v443_v9 = vmax.f32 %v409_v5, 0.0 }
 0x1cf   :  { %792 = vmatpush3.bf16.xpose.msra.mxu0 %v791_v57  ;;  %v442_v10 = vmax.f32 %v404_v8, 0.0  ;;  %v709_v11 = vpop.f32.mrb[28].mxu1 }
 0x1d0   :  { %793 = vmatprep.subr.bf16.mxu0 %v838_v29  ;;  %v419_v12 = vadd.f32 %v709_v11, %v561_v33  ;;  %v413_v13 = vpop.f32.mrb[29].mxu1 }
 0x1d1   :  { %v800_v14 = vpack.c.bf16 %v443_v9, %v442_v10  ;;  %v414_v15 = vadd.f32 %v561_v33, %v413_v13 }
 0x1d2   :  { %v445_v16 = vmax.f32 %v419_v12, 0.0 }
 0x1d3   :  { %v444_v17 = vmax.f32 %v414_v15, 0.0  ;;  %v712_v18 = vpop.f32.mrb[30].mxu1 }
 0x1d4   :  { %v429_v19 = vadd.f32 %v712_v18, %v561_v33  ;;  %v423_v20 = vpop.f32.mrb[31].mxu1 }
 0x1d5   :  { %v803_v21 = vpack.c.bf16 %v445_v16, %v444_v17  ;;  %v424_v22 = vadd.f32 %v561_v33, %v423_v20 }
 0x1d6   :  { %v447_v23 = vmax.f32 %v429_v19, 0.0 }
 0x1d7   :  { %795 = vmatpush3.bf16.xpose.msra.mxu0 %v794_v0  ;;  %v446_v24 = vmax.f32 %v424_v22, 0.0 }
 0x1d8   :  { %796 = vmatprep.subr.bf16.mxu0 %v838_v29 }
 0x1d9   :  { %v806_v25 = vpack.c.bf16 %v447_v23, %v446_v24 }
 0x1df   :  { %798 = vmatpush3.bf16.xpose.msra.mxu0 %v797_v7 }
 0x1e0   :  { %799 = vmatprep.subr.bf16.mxu0 %v838_v29 }
 0x1e7   :  { %801 = vmatpush3.bf16.xpose.msra.mxu0 %v800_v14 }
 0x1e8   :  { %802 = vmatprep.subr.bf16.mxu0 %v838_v29 }
 0x1ef   :  { %804 = vmatpush3.bf16.xpose.msra.mxu0 %v803_v21 }
 0x1f0   :  { %805 = vmatprep.subr.bf16.mxu0 %v838_v29 }
 0x1f7   :  { %807 = vmatpush3.bf16.xpose.msra.mxu0 %v806_v25 }
 0x1fe   :  { %746 = vmatmul.mubr.f32.vlgmr.msra.gmra.mrb[0].mxu0 %v448_v26 }
 0x2d1   :  { %v525_v33 = vpop.f32.mrb[0].mxu0 }
 0x2d2   :  { %v526_v34 = vadd.f32 %v525_v33, %v458_v32  ;;  %v747_v35 = vpop.f32.mrb[1].mxu0 }
 0x2d4   :  { %529 = vst [vmem:[#allocation3] sm:$0x1] %v526_v34 }
 0x2d5   :  { %825 = shalt.err (!%p822_p4)
}
 0x2d6   :  { %s826_s26 = scalar_lea.hbm %s1040_s7, 16 }
 0x2d7   :  { %p827_p5 = scmp.ne.s32.totalorder %s1040_s7, %s826_s26  ;;  %p830_p6 = scmp.lt.u32.totalorder %s826_s26, %s1040_s7 }
 0x2d9   :  { %p832_p7 = pnand %p830_p6, %p827_p5 }
 0x2db   :  { %835 = shalt.err (!%p832_p7)
}
 0x2dc   :  { %539 = dma.vmem_to_hbm [thread:$0]  %s537_s22, 16, %s1040_s7, [#allocation4]  }
 0x2dd   :  { %836 = dma.done.wait [#allocation4], 16  }
 0x2de   :  { %837 = vsyncadd [#allocation4], 4294967280 }
 0x2df   :  { %543 = vsyncpa [#allocation4], 1 }

</bundles_post_ra>
